<compile_context>
chip_gen: v7x
topology: tpu7x:2x2x1
jax: 0.10.0
libtpu: 0.0.40
codegen_flags: <defaults>
</compile_context>

<pallas_src>
import functools

import jax
import jax.numpy as jnp
from jax.experimental import pallas as pl
from jax.experimental.pallas import tpu as pltpu

BN_EPS = 1e-5
_MIB = 1024 * 1024


# ----------------------------------------------------------------------------
# Per-chip VMEM budgeting
# ----------------------------------------------------------------------------
@functools.lru_cache(maxsize=1)
def _vmem_capacity_bytes():
    try:
        return int(pltpu.get_tpu_info().vmem_capacity_bytes)
    except Exception:
        return 64 * _MIB            # v7x-safe lower bound if query unavailable


def _vmem_limit_bytes():
    # Explicit scoped-VMEM limit for Mosaic (leaves headroom below physical).
    return int(_vmem_capacity_bytes() * 3 // 4)


def _tile_budget_bytes():
    # Activation-tile budget; the per-column accounting below already includes
    # double buffers, so ~1/4 of physical VMEM is a safe ceiling on every chip
    # (16 MiB on v7x, 32 MiB on v5e/v6e).
    return int(_vmem_capacity_bytes() // 4)


def _pick_tc(cout, max_tc=512):
    """Largest divisor of cout that is a multiple of 8 and <= max_tc, else cout."""
    if cout <= max_tc:
        return cout
    best = None
    for tc in range(8, max_tc + 1, 8):
        if cout % tc == 0:
            best = tc
    return best if best is not None else cout


def _pick_tp(p, per_col_bytes, fixed_bytes, prefer_split=False):
    """Pixel-tile size: largest 128-multiple divisor of p (or p itself) whose
    accounted VMEM footprint fits the per-chip tile budget.  With prefer_split,
    prefer >=2 tiles so a degenerate batch still shards across v7x's 2 cores."""
    cands = [m * 128 for m in range(1, p // 128 + 1) if p % (m * 128) == 0]
    if p not in cands:
        cands.append(p)                       # full dim is always legal
    cands.sort()
    avail = max(_tile_budget_bytes() - fixed_bytes, 0)
    cap = avail // max(per_col_bytes, 1)
    fitting = [t for t in cands if t <= cap]
    pool = fitting if fitting else cands[:1]  # smallest legal tile if none fit
    if prefer_split:
        split = [t for t in pool if p // t >= 2]
        if split:
            return split[-1]
    return pool[-1]


# ----------------------------------------------------------------------------
# Kernel 1: fused  relu(W @ X + b)  (bf16 out) + per-tile partial channel stats
# ----------------------------------------------------------------------------
def _conv_relu_stats_kernel(x_ref, w_ref, b_ref, r_ref, s_ref, sq_ref):
    a = x_ref[0].astype(jnp.bfloat16)                               # (Cin, tp)
    y = jnp.dot(w_ref[...], a, preferred_element_type=jnp.float32)  # (tc, tp)
    y = y + b_ref[...]                                              # lane bcast
    r = jnp.maximum(y, 0.0)                                         # ReLU (f32)
    r16 = r.astype(jnp.bfloat16)
    r_ref[0] = r16                                                  # bf16 intermediate
    rs = r16.astype(jnp.float32)        # stats on post-cast values -> consistent w/ pass 2
    s_ref[0] = jnp.sum(rs, axis=-1, keepdims=True)                  # partial sums
    sq_ref[0] = jnp.sum(rs * rs, axis=-1, keepdims=True)


def conv_relu_stats(x, w, b):
    """x: (N, Cin, P) f32, w: (Cout, Cin) bf16, b: (Cout, 1) f32.

    Returns (relu(w@x+b): (N, Cout, P) bf16,
             partial sums:   (N*GP, Cout, 1) f32,
             partial sumsq:  (N*GP, Cout, 1) f32).
    """
    n, cin, p = x.shape
    cout = w.shape[0]
    tc = _pick_tc(cout)
    gc = cout // tc

    # Per-lane-column VMEM bytes: x tile f32 (x2 bufs) + in-kernel bf16 copy of x
    # + f32 matmul/ReLU/stat temporaries (~3x) + bf16 result + bf16 out tile (x2 bufs).
    per_col = cin * 4 * 2 + cin * 2 + tc * 4 * 3 + tc * 2 + tc * 2 * 2
    # Fixed bytes: double-buffered bf16 weight block + bias / stats blocks.
    fixed = tc * cin * 2 * 2 + tc * 4 * 4
    tp = _pick_tp(p, per_col, fixed, prefer_split=(n * gc < 2))
    gp = p // tp

    flops = 2 * n * cout * cin * p
    bytes_accessed = (n * cin * p * 4 + cout * cin * 2
                      + n * cout * p * 2 + 2 * n * gp * cout * 4)

    return pl.pallas_call(
        _conv_relu_stats_kernel,
        out_shape=(
            jax.ShapeDtypeStruct((n, cout, p), jnp.bfloat16),
            jax.ShapeDtypeStruct((n * gp, cout, 1), jnp.float32),
            jax.ShapeDtypeStruct((n * gp, cout, 1), jnp.float32),
        ),
        grid_spec=pltpu.PrefetchScalarGridSpec(
            num_scalar_prefetch=0,
            grid=(n, gc, gp),          # pixel axis innermost -> weight stays resident per c
            in_specs=[
                pl.BlockSpec((1, cin, tp), lambda i, c, j: (i, 0, j)),
                pl.BlockSpec((tc, cin), lambda i, c, j: (c, 0)),
                pl.BlockSpec((tc, 1), lambda i, c, j: (c, 0)),
            ],
            out_specs=[
                pl.BlockSpec((1, tc, tp), lambda i, c, j: (i, c, j)),
                pl.BlockSpec((1, tc, 1), lambda i, c, j: (i * gp + j, c, 0)),
                pl.BlockSpec((1, tc, 1), lambda i, c, j: (i * gp + j, c, 0)),
            ],
        ),
        compiler_params=pltpu.CompilerParams(
            dimension_semantics=("parallel", "parallel", "parallel"),
            vmem_limit_bytes=_vmem_limit_bytes()),
        cost_estimate=pl.CostEstimate(flops=flops, transcendentals=0,
                                      bytes_accessed=bytes_accessed),
    )(x, w, b)


# ----------------------------------------------------------------------------
# Kernel 2: fused channel-concat + BatchNorm affine (bf16 in, f32 NCHW out)
# ----------------------------------------------------------------------------
def _make_concat_bn_kernel(up_out):
    def kernel(t_ref, x_ref, st_ref, sht_ref, sx_ref, shx_ref, o_ref):
        # NOTE: up_out being a multiple of 8 keeps both stores sublane-aligned
        # (non-multiples are still correct, just partially masked stores).
        o_ref[0, :up_out, :] = (t_ref[0].astype(jnp.float32) * st_ref[...]
                                + sht_ref[...])
        o_ref[0, up_out:, :] = (x_ref[0].astype(jnp.float32) * sx_ref[...]
                                + shx_ref[...])
    return kernel


def concat_bn_apply(r_tr, r_x, scale_tr, shift_tr, scale_x, shift_x):
    """r_tr: (N, up_out, P) bf16, r_x: (N, x_out, P) bf16; scales/shifts: (C, 1) f32."""
    n, up_out, p = r_tr.shape
    x_out = r_x.shape[1]
    n_out = up_out + x_out

    # bf16 inputs (x2 bufs) + f32 upcasts + f32 result temp + f32 out tile (x2 bufs).
    per_col = ((up_out + x_out) * 2 * 2 + (up_out + x_out) * 4
               + n_out * 4 + n_out * 4 * 2)
    fixed = 4 * n_out * 4 * 2                      # scale/shift blocks
    tp = _pick_tp(p, per_col, fixed, prefer_split=(n < 2))
    gp = p // tp

    flops = 2 * n * n_out * p
    bytes_accessed = (n * (up_out + x_out) * p * 2 + n * n_out * p * 4
                      + 4 * n_out * 4)

    return pl.pallas_call(
        _make_concat_bn_kernel(up_out),
        out_shape=jax.ShapeDtypeStruct((n, n_out, p), jnp.float32),
        grid_spec=pltpu.PrefetchScalarGridSpec(
            num_scalar_prefetch=0,
            grid=(n, gp),
            in_specs=[
                pl.BlockSpec((1, up_out, tp), lambda i, j: (i, 0, j)),
                pl.BlockSpec((1, x_out, tp), lambda i, j: (i, 0, j)),
                pl.BlockSpec((up_out, 1), lambda i, j: (0, 0)),
                pl.BlockSpec((up_out, 1), lambda i, j: (0, 0)),
                pl.BlockSpec((x_out, 1), lambda i, j: (0, 0)),
                pl.BlockSpec((x_out, 1), lambda i, j: (0, 0)),
            ],
            out_specs=pl.BlockSpec((1, n_out, tp), lambda i, j: (i, 0, j)),
        ),
        compiler_params=pltpu.CompilerParams(
            dimension_semantics=("parallel", "parallel"),
            vmem_limit_bytes=_vmem_limit_bytes()),
        cost_estimate=pl.CostEstimate(flops=flops, transcendentals=0,
                                      bytes_accessed=bytes_accessed),
    )(r_tr, r_x, scale_tr, shift_tr, scale_x, shift_x)


# ----------------------------------------------------------------------------
# UnetBlock forward (training-mode BatchNorm: batch statistics of relu(cat))
# ----------------------------------------------------------------------------
@jax.jit
def unet_block_forward(up_p, x_p, params):
    """up_p: (N, up_in, H, W) NCHW;  x_p: (N, x_in, 2H, 2W) NCHW -> (N, n_out, 2H, 2W)."""
    wt, bt = params["tr_w"], params["tr_b"]       # (up_in, up_out, 2, 2), (up_out,)
    wx, bx = params["x_w"], params["x_b"]         # (x_out, x_in, 1, 1), (x_out,)
    gamma, beta = params["bn_w"], params["bn_b"]  # (n_out,), (n_out,)

    n, up_in, h, w = up_p.shape
    _, x_in, h2, w2 = x_p.shape
    up_out = wt.shape[1]
    x_out = wx.shape[0]
    n_out = up_out + x_out
    p1 = h * w
    p2 = h2 * w2

    # ConvTranspose2d(k=2, s=2) == 4 independent 1x1 convs; weight rows (o, di, dj).
    w_tr = jnp.transpose(wt, (1, 2, 3, 0)).reshape(4 * up_out, up_in).astype(jnp.bfloat16)
    b_tr = jnp.repeat(bt, 4).reshape(4 * up_out, 1).astype(jnp.float32)
    w_x = wx.reshape(x_out, x_in).astype(jnp.bfloat16)
    b_x = bx.reshape(x_out, 1).astype(jnp.float32)

    # ---- pass 1: fused conv + bias + ReLU + partial BN stats (bf16 intermediates) ----
    r_tr4, s_tr, sq_tr = conv_relu_stats(up_p.reshape(n, up_in, p1), w_tr, b_tr)
    r_x, s_x, sq_x = conv_relu_stats(x_p.reshape(n, x_in, p2), w_x, b_x)

    # Sub-pixel scatter of the tr branch: [n, o*4+di*2+dj, h, w] -> [n, o, 2h+di, 2w+dj]
    # (now bf16, half the previous bytes).
    # TODO(synk): fold this stride-2 interleave into a kernel (needs in-VMEM
    # sublane->lane shuffle / bf16->u32 packing; a rectangular BlockSpec cannot
    # express it).
    r_tr = (r_tr4.reshape(n, up_out, 2, 2, h, w)
            .transpose(0, 1, 4, 2, 5, 3)
            .reshape(n, up_out, p2))

    # ---- BN batch statistics (training mode, biased variance, f32 accumulation) ----
    # NOTE: E[x^2]-E[x]^2 in f32 can cancel for low-variance channels; clamped at 0.
    count = jnp.float32(n * p2)
    sum_tr = jnp.sum(s_tr[:, :, 0], axis=0).reshape(up_out, 4).sum(axis=-1)
    ssq_tr = jnp.sum(sq_tr[:, :, 0], axis=0).reshape(up_out, 4).sum(axis=-1)
    sum_x = jnp.sum(s_x[:, :, 0], axis=0)
    ssq_x = jnp.sum(sq_x[:, :, 0], axis=0)
    mean = jnp.concatenate([sum_tr, sum_x]) / count
    var = jnp.concatenate([ssq_tr, ssq_x]) / count - mean * mean
    var = jnp.maximum(var, 0.0)
    scale = gamma * jax.lax.rsqrt(var + BN_EPS)
    shift = beta - mean * scale

    # ---- pass 2: fused concat + BN affine, straight into the NCHW output ----
    y = concat_bn_apply(
        r_tr, r_x,
        scale[:up_out].reshape(up_out, 1), shift[:up_out].reshape(up_out, 1),
        scale[up_out:].reshape(x_out, 1), shift[up_out:].reshape(x_out, 1))
    return y.reshape(n, n_out, h2, w2)


# ----------------------------------------------------------------------------
# Pure-JAX f32 reference (straight from the nn.Module definition)
# ----------------------------------------------------------------------------
def ref_forward(up_p, x_p, params):
    wt, bt = params["tr_w"], params["tr_b"]
    wx, bx = params["x_w"], params["x_b"]
    gamma, beta = params["bn_w"], params["bn_b"]
    n, _, h, w = up_p.shape
    up_out = wt.shape[1]
    x_out = wx.shape[0]
    hp = jax.lax.Precision.HIGHEST
    t = jnp.einsum("nchw,coij->nohiwj", up_p, wt, precision=hp).reshape(
        n, up_out, 2 * h, 2 * w) + bt[None, :, None, None]
    xo = jnp.einsum("nchw,oc->nohw", x_p, wx.reshape(x_out, -1), precision=hp)
    xo = xo + bx[None, :, None, None]
    r = jnp.maximum(jnp.concatenate([t, xo], axis=1), 0.0)
    mean = r.mean(axis=(0, 2, 3))
    var = r.var(axis=(0, 2, 3))                   # biased, as in BN training mode
    return (gamma[None, :, None, None] * (r - mean[None, :, None, None])
            / jnp.sqrt(var[None, :, None, None] + BN_EPS)
            + beta[None, :, None, None])


# ----------------------------------------------------------------------------
if __name__ == "__main__":
    # Small shapes: UnetBlock(up_in=8, x_in=8, n_out=16); up_p spatial 8 -> 16.
    N, UP_IN, X_IN, N_OUT = 2, 8, 8, 16
    H = W = 8
    UP_OUT = X_OUT = N_OUT // 2

    key = jax.random.PRNGKey(0)
    k1, k2, k3, k4, k5, k6 = jax.random.split(key, 6)
    params = {
        "tr_w": 0.1 * jax.random.normal(k1, (UP_IN, UP_OUT, 2, 2), jnp.float32),
        "tr_b": 0.1 * jax.random.normal(k2, (UP_OUT,), jnp.float32),
        "x_w": 0.1 * jax.random.normal(k3, (X_OUT, X_IN, 1, 1), jnp.float32),
        "x_b": 0.1 * jax.random.normal(k4, (X_OUT,), jnp.float32),
        "bn_w": jnp.ones((N_OUT,), jnp.float32),
        "bn_b": jnp.zeros((N_OUT,), jnp.float32),
    }
    up_p = jax.random.normal(k5, (N, UP_IN, H, W), jnp.float32)
    x_p = jax.random.normal(k6, (N, X_IN, 2 * H, 2 * W), jnp.float32)

    out = unet_block_forward(up_p, x_p, params)
    jax.block_until_ready(out)

    ref = ref_forward(up_p, x_p, params)
    assert out.shape == (N, N_OUT, 2 * H, 2 * W), out.shape
    # bf16 MXU operands + bf16 intermediates (f32 accumulation/affine) vs. an
    # f32-HIGHEST reference: allow bf16-level tolerance on the normalized output.
    diff = jnp.abs(out - ref)
    max_err = float(jnp.max(diff))
    mean_err = float(jnp.mean(diff))
    assert max_err < 1e-1, (max_err, mean_err)
    assert mean_err < 1e-2, (max_err, mean_err)
    print("KERNEL_OK")
</pallas_src>

<mosaic_0001>
module attributes {stable_mosaic.version = 11 : i64} {
  func.func @_conv_relu_stats_kernel(%arg0: i32, %arg1: i32, %arg2: i32, %arg3: memref<1x8x256xf32, #tpu.memory_space<vmem>>, %arg4: memref<8x8xbf16, #tpu.memory_space<vmem>>, %arg5: memref<8x1xf32, #tpu.memory_space<vmem>>, %arg6: memref<1x8x256xbf16, #tpu.memory_space<vmem>>, %arg7: memref<1x8x1xf32, #tpu.memory_space<vmem>>, %arg8: memref<1x8x1xf32, #tpu.memory_space<vmem>>) attributes {dimension_semantics = [#tpu.dimension_semantics<parallel>, #tpu.dimension_semantics<parallel>, #tpu.dimension_semantics<parallel>], iteration_bounds = array<i64: 2, 1, 1>, scalar_prefetch = 0 : i64, scratch_operands = 0 : i64, tpu.core_type = #tpu.core_type<tc>, window_params = [{transform_indices = @transform_0, window_bounds = array<i64: 1, 8, 256>}, {transform_indices = @transform_1, window_bounds = array<i64: 8, 8>}, {transform_indices = @transform_2, window_bounds = array<i64: 8, 1>}, {transform_indices = @transform_3, window_bounds = array<i64: 1, 8, 256>}, {transform_indices = @transform_4, window_bounds = array<i64: 1, 8, 1>}, {transform_indices = @transform_5, window_bounds = array<i64: 1, 8, 1>}]} {
    %c0 = arith.constant 0 : index
    %c0_0 = arith.constant 0 : index
    %c0_1 = arith.constant 0 : index
    %0 = vector.load %arg3[%c0, %c0_0, %c0_1] : memref<1x8x256xf32, #tpu.memory_space<vmem>>, vector<1x8x256xf32>
    %1 = vector.shape_cast %0 : vector<1x8x256xf32> to vector<8x256xf32>
    %2 = arith.truncf %1 : vector<8x256xf32> to vector<8x256xbf16>
    %c0_2 = arith.constant 0 : index
    %c0_3 = arith.constant 0 : index
    %3 = vector.load %arg4[%c0_2, %c0_3] : memref<8x8xbf16, #tpu.memory_space<vmem>>, vector<8x8xbf16>
    %cst = arith.constant dense<0.000000e+00> : vector<8x256xf32>
    %4 = tpu.matmul %3, %2, %cst {dimension_numbers = #tpu.dot_dimension_numbers<[1], [0], [0], [1], [0, 0, 1, 1], [], []>} : vector<8x8xbf16>, vector<8x256xbf16>, vector<8x256xf32> -> vector<8x256xf32>
    %c0_4 = arith.constant 0 : index
    %c0_5 = arith.constant 0 : index
    %5 = vector.load %arg5[%c0_4, %c0_5] : memref<8x1xf32, #tpu.memory_space<vmem>>, vector<8x1xf32>
    %6 = vector.broadcast %5 : vector<8x1xf32> to vector<8x256xf32>
    %7 = arith.addf %4, %6 : vector<8x256xf32>
    %cst_6 = arith.constant 0.000000e+00 : f32
    %8 = vector.broadcast %cst_6 : f32 to vector<8x256xf32>
    %9 = arith.maximumf %7, %8 : vector<8x256xf32>
    %10 = arith.truncf %9 : vector<8x256xf32> to vector<8x256xbf16>
    %c0_7 = arith.constant 0 : index
    %c0_8 = arith.constant 0 : index
    %c0_9 = arith.constant 0 : index
    %11 = vector.load %arg6[%c0_7, %c0_8, %c0_9] : memref<1x8x256xbf16, #tpu.memory_space<vmem>>, vector<1x8x256xbf16>
    %12 = vector.shape_cast %11 : vector<1x8x256xbf16> to vector<8x256xbf16>
    %13 = vector.shape_cast %10 : vector<8x256xbf16> to vector<1x8x256xbf16>
    tpu.vector_store %arg6[%c0_7, %c0_8, %c0_9], %13 {strides = array<i32>} : memref<1x8x256xbf16, #tpu.memory_space<vmem>>, vector<1x8x256xbf16>,
    %14 = arith.extf %10 : vector<8x256xbf16> to vector<8x256xf32>
    %cst_10 = arith.constant dense<0.000000e+00> : vector<8xf32>
    %15 = vector.multi_reduction <add>, %14, %cst_10 [1] : vector<8x256xf32> to vector<8xf32>
    %16 = vector.shape_cast %15 : vector<8xf32> to vector<8x1xf32>
    %c0_11 = arith.constant 0 : index
    %c0_12 = arith.constant 0 : index
    %c0_13 = arith.constant 0 : index
    %17 = vector.load %arg7[%c0_11, %c0_12, %c0_13] : memref<1x8x1xf32, #tpu.memory_space<vmem>>, vector<1x8x1xf32>
    %18 = vector.shape_cast %17 : vector<1x8x1xf32> to vector<8x1xf32>
    %19 = vector.shape_cast %16 : vector<8x1xf32> to vector<1x8x1xf32>
    tpu.vector_store %arg7[%c0_11, %c0_12, %c0_13], %19 {strides = array<i32>} : memref<1x8x1xf32, #tpu.memory_space<vmem>>, vector<1x8x1xf32>,
    %20 = arith.mulf %14, %14 : vector<8x256xf32>
    %cst_14 = arith.constant dense<0.000000e+00> : vector<8xf32>
    %21 = vector.multi_reduction <add>, %20, %cst_14 [1] : vector<8x256xf32> to vector<8xf32>
    %22 = vector.shape_cast %21 : vector<8xf32> to vector<8x1xf32>
    %c0_15 = arith.constant 0 : index
    %c0_16 = arith.constant 0 : index
    %c0_17 = arith.constant 0 : index
    %23 = vector.load %arg8[%c0_15, %c0_16, %c0_17] : memref<1x8x1xf32, #tpu.memory_space<vmem>>, vector<1x8x1xf32>
    %24 = vector.shape_cast %23 : vector<1x8x1xf32> to vector<8x1xf32>
    %25 = vector.shape_cast %22 : vector<8x1xf32> to vector<1x8x1xf32>
    tpu.vector_store %arg8[%c0_15, %c0_16, %c0_17], %25 {strides = array<i32>} : memref<1x8x1xf32, #tpu.memory_space<vmem>>, vector<1x8x1xf32>,
    return
  }
  func.func @transform_0(%arg0: i32, %arg1: i32, %arg2: i32) -> (i32, i32, i32) {
    %c0_i32 = arith.constant 0 : i32
    %c0_i32_0 = arith.constant 0 : i32
    return %arg0, %c0_i32, %arg2 : i32, i32, i32
  }
  func.func @transform_1(%arg0: i32, %arg1: i32, %arg2: i32) -> (i32, i32) {
    %c0_i32 = arith.constant 0 : i32
    %c0_i32_0 = arith.constant 0 : i32
    return %arg1, %c0_i32 : i32, i32
  }
  func.func @transform_2(%arg0: i32, %arg1: i32, %arg2: i32) -> (i32, i32) {
    %c0_i32 = arith.constant 0 : i32
    %c0_i32_0 = arith.constant 0 : i32
    return %arg1, %c0_i32 : i32, i32
  }
  func.func @transform_3(%arg0: i32, %arg1: i32, %arg2: i32) -> (i32, i32, i32) {
    %c0_i32 = arith.constant 0 : i32
    return %arg0, %arg1, %arg2 : i32, i32, i32
  }
  func.func @transform_4(%arg0: i32, %arg1: i32, %arg2: i32) -> (i32, i32, i32) {
    %c1_i32 = arith.constant 1 : i32
    %0 = arith.muli %arg0, %c1_i32 : i32
    %1 = arith.addi %0, %arg2 : i32
    %c0_i32 = arith.constant 0 : i32
    %c0_i32_0 = arith.constant 0 : i32
    return %1, %arg1, %c0_i32 : i32, i32, i32
  }
  func.func @transform_5(%arg0: i32, %arg1: i32, %arg2: i32) -> (i32, i32, i32) {
    %c1_i32 = arith.constant 1 : i32
    %0 = arith.muli %arg0, %c1_i32 : i32
    %1 = arith.addi %0, %arg2 : i32
    %c0_i32 = arith.constant 0 : i32
    %c0_i32_0 = arith.constant 0 : i32
    return %1, %arg1, %c0_i32 : i32, i32, i32
  }
}

module attributes {stable_mosaic.version = 11 : i64} {
  func.func @_conv_relu_stats_kernel(%arg0: i32, %arg1: i32, %arg2: i32, %arg3: memref<1x8x64xf32, #tpu.memory_space<vmem>>, %arg4: memref<32x8xbf16, #tpu.memory_space<vmem>>, %arg5: memref<32x1xf32, #tpu.memory_space<vmem>>, %arg6: memref<1x32x64xbf16, #tpu.memory_space<vmem>>, %arg7: memref<1x32x1xf32, #tpu.memory_space<vmem>>, %arg8: memref<1x32x1xf32, #tpu.memory_space<vmem>>) attributes {dimension_semantics = [#tpu.dimension_semantics<parallel>, #tpu.dimension_semantics<parallel>, #tpu.dimension_semantics<parallel>], iteration_bounds = array<i64: 2, 1, 1>, scalar_prefetch = 0 : i64, scratch_operands = 0 : i64, tpu.core_type = #tpu.core_type<tc>, window_params = [{transform_indices = @transform_0, window_bounds = array<i64: 1, 8, 64>}, {transform_indices = @transform_1, window_bounds = array<i64: 32, 8>}, {transform_indices = @transform_2, window_bounds = array<i64: 32, 1>}, {transform_indices = @transform_3, window_bounds = array<i64: 1, 32, 64>}, {transform_indices = @transform_4, window_bounds = array<i64: 1, 32, 1>}, {transform_indices = @transform_5, window_bounds = array<i64: 1, 32, 1>}]} {
    %c0 = arith.constant 0 : index
    %c0_0 = arith.constant 0 : index
    %c0_1 = arith.constant 0 : index
    %0 = vector.load %arg3[%c0, %c0_0, %c0_1] : memref<1x8x64xf32, #tpu.memory_space<vmem>>, vector<1x8x64xf32>
    %1 = vector.shape_cast %0 : vector<1x8x64xf32> to vector<8x64xf32>
    %2 = arith.truncf %1 : vector<8x64xf32> to vector<8x64xbf16>
    %c0_2 = arith.constant 0 : index
    %c0_3 = arith.constant 0 : index
    %3 = vector.load %arg4[%c0_2, %c0_3] : memref<32x8xbf16, #tpu.memory_space<vmem>>, vector<32x8xbf16>
    %cst = arith.constant dense<0.000000e+00> : vector<32x64xf32>
    %4 = tpu.matmul %3, %2, %cst {dimension_numbers = #tpu.dot_dimension_numbers<[1], [0], [0], [1], [0, 0, 1, 1], [], []>} : vector<32x8xbf16>, vector<8x64xbf16>, vector<32x64xf32> -> vector<32x64xf32>
    %c0_4 = arith.constant 0 : index
    %c0_5 = arith.constant 0 : index
    %5 = vector.load %arg5[%c0_4, %c0_5] : memref<32x1xf32, #tpu.memory_space<vmem>>, vector<32x1xf32>
    %6 = vector.broadcast %5 : vector<32x1xf32> to vector<32x64xf32>
    %7 = arith.addf %4, %6 : vector<32x64xf32>
    %cst_6 = arith.constant 0.000000e+00 : f32
    %8 = vector.broadcast %cst_6 : f32 to vector<32x64xf32>
    %9 = arith.maximumf %7, %8 : vector<32x64xf32>
    %10 = arith.truncf %9 : vector<32x64xf32> to vector<32x64xbf16>
    %c0_7 = arith.constant 0 : index
    %c0_8 = arith.constant 0 : index
    %c0_9 = arith.constant 0 : index
    %11 = vector.load %arg6[%c0_7, %c0_8, %c0_9] : memref<1x32x64xbf16, #tpu.memory_space<vmem>>, vector<1x32x64xbf16>
    %12 = vector.shape_cast %11 : vector<1x32x64xbf16> to vector<32x64xbf16>
    %13 = vector.shape_cast %10 : vector<32x64xbf16> to vector<1x32x64xbf16>
    tpu.vector_store %arg6[%c0_7, %c0_8, %c0_9], %13 {strides = array<i32>} : memref<1x32x64xbf16, #tpu.memory_space<vmem>>, vector<1x32x64xbf16>,
    %14 = arith.extf %10 : vector<32x64xbf16> to vector<32x64xf32>
    %cst_10 = arith.constant dense<0.000000e+00> : vector<32xf32>
    %15 = vector.multi_reduction <add>, %14, %cst_10 [1] : vector<32x64xf32> to vector<32xf32>
    %16 = vector.shape_cast %15 : vector<32xf32> to vector<32x1xf32>
    %c0_11 = arith.constant 0 : index
    %c0_12 = arith.constant 0 : index
    %c0_13 = arith.constant 0 : index
    %17 = vector.load %arg7[%c0_11, %c0_12, %c0_13] : memref<1x32x1xf32, #tpu.memory_space<vmem>>, vector<1x32x1xf32>
    %18 = vector.shape_cast %17 : vector<1x32x1xf32> to vector<32x1xf32>
    %19 = vector.shape_cast %16 : vector<32x1xf32> to vector<1x32x1xf32>
    tpu.vector_store %arg7[%c0_11, %c0_12, %c0_13], %19 {strides = array<i32>} : memref<1x32x1xf32, #tpu.memory_space<vmem>>, vector<1x32x1xf32>,
    %20 = arith.mulf %14, %14 : vector<32x64xf32>
    %cst_14 = arith.constant dense<0.000000e+00> : vector<32xf32>
    %21 = vector.multi_reduction <add>, %20, %cst_14 [1] : vector<32x64xf32> to vector<32xf32>
    %22 = vector.shape_cast %21 : vector<32xf32> to vector<32x1xf32>
    %c0_15 = arith.constant 0 : index
    %c0_16 = arith.constant 0 : index
    %c0_17 = arith.constant 0 : index
    %23 = vector.load %arg8[%c0_15, %c0_16, %c0_17] : memref<1x32x1xf32, #tpu.memory_space<vmem>>, vector<1x32x1xf32>
    %24 = vector.shape_cast %23 : vector<1x32x1xf32> to vector<32x1xf32>
    %25 = vector.shape_cast %22 : vector<32x1xf32> to vector<1x32x1xf32>
    tpu.vector_store %arg8[%c0_15, %c0_16, %c0_17], %25 {strides = array<i32>} : memref<1x32x1xf32, #tpu.memory_space<vmem>>, vector<1x32x1xf32>,
    return
  }
  func.func @transform_0(%arg0: i32, %arg1: i32, %arg2: i32) -> (i32, i32, i32) {
    %c0_i32 = arith.constant 0 : i32
    %c0_i32_0 = arith.constant 0 : i32
    return %arg0, %c0_i32, %arg2 : i32, i32, i32
  }
  func.func @transform_1(%arg0: i32, %arg1: i32, %arg2: i32) -> (i32, i32) {
    %c0_i32 = arith.constant 0 : i32
    %c0_i32_0 = arith.constant 0 : i32
    return %arg1, %c0_i32 : i32, i32
  }
  func.func @transform_2(%arg0: i32, %arg1: i32, %arg2: i32) -> (i32, i32) {
    %c0_i32 = arith.constant 0 : i32
    %c0_i32_0 = arith.constant 0 : i32
    return %arg1, %c0_i32 : i32, i32
  }
  func.func @transform_3(%arg0: i32, %arg1: i32, %arg2: i32) -> (i32, i32, i32) {
    %c0_i32 = arith.constant 0 : i32
    return %arg0, %arg1, %arg2 : i32, i32, i32
  }
  func.func @transform_4(%arg0: i32, %arg1: i32, %arg2: i32) -> (i32, i32, i32) {
    %c1_i32 = arith.constant 1 : i32
    %0 = arith.muli %arg0, %c1_i32 : i32
    %1 = arith.addi %0, %arg2 : i32
    %c0_i32 = arith.constant 0 : i32
    %c0_i32_0 = arith.constant 0 : i32
    return %1, %arg1, %c0_i32 : i32, i32, i32
  }
  func.func @transform_5(%arg0: i32, %arg1: i32, %arg2: i32) -> (i32, i32, i32) {
    %c1_i32 = arith.constant 1 : i32
    %0 = arith.muli %arg0, %c1_i32 : i32
    %1 = arith.addi %0, %arg2 : i32
    %c0_i32 = arith.constant 0 : i32
    %c0_i32_0 = arith.constant 0 : i32
    return %1, %arg1, %c0_i32 : i32, i32, i32
  }
}

module attributes {stable_mosaic.version = 11 : i64} {
  func.func @kernel(%arg0: i32, %arg1: i32, %arg2: memref<1x8x256xbf16, #tpu.memory_space<vmem>>, %arg3: memref<1x8x256xbf16, #tpu.memory_space<vmem>>, %arg4: memref<8x1xf32, #tpu.memory_space<vmem>>, %arg5: memref<8x1xf32, #tpu.memory_space<vmem>>, %arg6: memref<8x1xf32, #tpu.memory_space<vmem>>, %arg7: memref<8x1xf32, #tpu.memory_space<vmem>>, %arg8: memref<1x16x256xf32, #tpu.memory_space<vmem>>) attributes {dimension_semantics = [#tpu.dimension_semantics<parallel>, #tpu.dimension_semantics<parallel>], iteration_bounds = array<i64: 2, 1>, scalar_prefetch = 0 : i64, scratch_operands = 0 : i64, tpu.core_type = #tpu.core_type<tc>, window_params = [{transform_indices = @transform_0, window_bounds = array<i64: 1, 8, 256>}, {transform_indices = @transform_1, window_bounds = array<i64: 1, 8, 256>}, {pipeline_mode = #tpu.pipeline_mode<synchronous>, transform_indices = @transform_2, window_bounds = array<i64: 8, 1>}, {pipeline_mode = #tpu.pipeline_mode<synchronous>, transform_indices = @transform_3, window_bounds = array<i64: 8, 1>}, {pipeline_mode = #tpu.pipeline_mode<synchronous>, transform_indices = @transform_4, window_bounds = array<i64: 8, 1>}, {pipeline_mode = #tpu.pipeline_mode<synchronous>, transform_indices = @transform_5, window_bounds = array<i64: 8, 1>}, {transform_indices = @transform_6, window_bounds = array<i64: 1, 16, 256>}]} {
    %c0 = arith.constant 0 : index
    %c0_0 = arith.constant 0 : index
    %c0_1 = arith.constant 0 : index
    %0 = vector.load %arg2[%c0, %c0_0, %c0_1] : memref<1x8x256xbf16, #tpu.memory_space<vmem>>, vector<1x8x256xbf16>
    %1 = vector.shape_cast %0 : vector<1x8x256xbf16> to vector<8x256xbf16>
    %2 = arith.extf %1 : vector<8x256xbf16> to vector<8x256xf32>
    %c0_2 = arith.constant 0 : index
    %c0_3 = arith.constant 0 : index
    %3 = vector.load %arg4[%c0_2, %c0_3] : memref<8x1xf32, #tpu.memory_space<vmem>>, vector<8x1xf32>
    %4 = vector.broadcast %3 : vector<8x1xf32> to vector<8x256xf32>
    %5 = arith.mulf %2, %4 : vector<8x256xf32>
    %c0_4 = arith.constant 0 : index
    %c0_5 = arith.constant 0 : index
    %6 = vector.load %arg5[%c0_4, %c0_5] : memref<8x1xf32, #tpu.memory_space<vmem>>, vector<8x1xf32>
    %7 = vector.broadcast %6 : vector<8x1xf32> to vector<8x256xf32>
    %8 = arith.addf %5, %7 : vector<8x256xf32>
    %c0_6 = arith.constant 0 : index
    %c0_7 = arith.constant 0 : index
    %c0_8 = arith.constant 0 : index
    %9 = vector.load %arg8[%c0_6, %c0_7, %c0_8] : memref<1x16x256xf32, #tpu.memory_space<vmem>>, vector<1x8x256xf32>
    %10 = vector.shape_cast %9 : vector<1x8x256xf32> to vector<8x256xf32>
    %11 = vector.shape_cast %8 : vector<8x256xf32> to vector<1x8x256xf32>
    tpu.vector_store %arg8[%c0_6, %c0_7, %c0_8], %11 {strides = array<i32>} : memref<1x16x256xf32, #tpu.memory_space<vmem>>, vector<1x8x256xf32>,
    %c0_9 = arith.constant 0 : index
    %c0_10 = arith.constant 0 : index
    %c0_11 = arith.constant 0 : index
    %12 = vector.load %arg3[%c0_9, %c0_10, %c0_11] : memref<1x8x256xbf16, #tpu.memory_space<vmem>>, vector<1x8x256xbf16>
    %13 = vector.shape_cast %12 : vector<1x8x256xbf16> to vector<8x256xbf16>
    %14 = arith.extf %13 : vector<8x256xbf16> to vector<8x256xf32>
    %c0_12 = arith.constant 0 : index
    %c0_13 = arith.constant 0 : index
    %15 = vector.load %arg6[%c0_12, %c0_13] : memref<8x1xf32, #tpu.memory_space<vmem>>, vector<8x1xf32>
    %16 = vector.broadcast %15 : vector<8x1xf32> to vector<8x256xf32>
    %17 = arith.mulf %14, %16 : vector<8x256xf32>
    %c0_14 = arith.constant 0 : index
    %c0_15 = arith.constant 0 : index
    %18 = vector.load %arg7[%c0_14, %c0_15] : memref<8x1xf32, #tpu.memory_space<vmem>>, vector<8x1xf32>
    %19 = vector.broadcast %18 : vector<8x1xf32> to vector<8x256xf32>
    %20 = arith.addf %17, %19 : vector<8x256xf32>
    %c0_16 = arith.constant 0 : index
    %c8 = arith.constant 8 : index
    %c0_17 = arith.constant 0 : index
    %21 = vector.load %arg8[%c0_16, %c8, %c0_17] : memref<1x16x256xf32, #tpu.memory_space<vmem>>, vector<1x8x256xf32>
    %22 = vector.shape_cast %21 : vector<1x8x256xf32> to vector<8x256xf32>
    %23 = vector.shape_cast %20 : vector<8x256xf32> to vector<1x8x256xf32>
    tpu.vector_store %arg8[%c0_16, %c8, %c0_17], %23 {strides = array<i32>} : memref<1x16x256xf32, #tpu.memory_space<vmem>>, vector<1x8x256xf32>,
    return
  }
  func.func @transform_0(%arg0: i32, %arg1: i32) -> (i32, i32, i32) {
    %c0_i32 = arith.constant 0 : i32
    %c0_i32_0 = arith.constant 0 : i32
    return %arg0, %c0_i32, %arg1 : i32, i32, i32
  }
  func.func @transform_1(%arg0: i32, %arg1: i32) -> (i32, i32, i32) {
    %c0_i32 = arith.constant 0 : i32
    %c0_i32_0 = arith.constant 0 : i32
    return %arg0, %c0_i32, %arg1 : i32, i32, i32
  }
  func.func @transform_2(%arg0: i32, %arg1: i32) -> (i32, i32) {
    %c0_i32 = arith.constant 0 : i32
    %c0_i32_0 = arith.constant 0 : i32
    %c0_i32_1 = arith.constant 0 : i32
    return %c0_i32, %c0_i32_0 : i32, i32
  }
  func.func @transform_3(%arg0: i32, %arg1: i32) -> (i32, i32) {
    %c0_i32 = arith.constant 0 : i32
    %c0_i32_0 = arith.constant 0 : i32
    %c0_i32_1 = arith.constant 0 : i32
    return %c0_i32, %c0_i32_0 : i32, i32
  }
  func.func @transform_4(%arg0: i32, %arg1: i32) -> (i32, i32) {
    %c0_i32 = arith.constant 0 : i32
    %c0_i32_0 = arith.constant 0 : i32
    %c0_i32_1 = arith.constant 0 : i32
    return %c0_i32, %c0_i32_0 : i32, i32
  }
  func.func @transform_5(%arg0: i32, %arg1: i32) -> (i32, i32) {
    %c0_i32 = arith.constant 0 : i32
    %c0_i32_0 = arith.constant 0 : i32
    %c0_i32_1 = arith.constant 0 : i32
    return %c0_i32, %c0_i32_0 : i32, i32
  }
  func.func @transform_6(%arg0: i32, %arg1: i32) -> (i32, i32, i32) {
    %c0_i32 = arith.constant 0 : i32
    %c0_i32_0 = arith.constant 0 : i32
    return %arg0, %c0_i32, %arg1 : i32, i32, i32
  }
}

</mosaic_0001>

<bundles_post_ra>
// kernel: unet_block_forward.4
= control target key start
LH: loop header
LB: loop body
LE: loop exit
PB: predicated region body
PF: predicated region fallthrough
CT: control target
= control target key end

     0   :  { %s776_s18 = smov 0   ;;  %s778_s19 = smov 0   ;;  %s821_s0 = inlined_call_operand.vmem [shape: f32[2,8,256], index: 0, kind: input, shape index: {}]   ;;  %s822_s1 = inlined_call_operand.vmem [shape: bf16[8,8], index: 1, kind: input, shape index: {}]   ;;  %s823_s2 = inlined_call_operand.vmem [shape: f32[8,1], index: 2, kind: input, shape index: {}]   ;;  %s824_s3 = inlined_call_operand.vmem [shape: bf16[2,8,256], index: 3, kind: output, shape index: {0}]   ;;  %s825_s4 = inlined_call_operand.vmem [shape: f32[2,8,1], index: 4, kind: output, shape index: {1}]   ;;  %s826_s5 = inlined_call_operand.vmem [shape: f32[2,8,1], index: 5, kind: output, shape index: {2}]  }
   0x1   :  { %s780_s20 = smov 0  }
   0x2 LB: > { %s35_s21 = sadd.s32 1, %s739_s19  ;;  %p680_p0 = scmp.ge.s32.totalorder %s743_s20, 1  ;;  %s743_s20 = sphi %s780_s20, %s16_s20   ;;  %s739_s19 = sphi %s778_s19, %s828_s19   ;;  %s735_s18 = sphi %s776_s18, %s827_s18  }
   0x3   : > { %p37_p1 = scmp.ge.s32.totalorder %s35_s21, 2  ;;  %p248_p2 = scmp.lt.s32.totalorder %s743_s20, 3 }
   0x5   : > { %s830_s21 = smov (%p37_p1, %s35_s21), 0  ;;  %p249_p3 = pnand %p680_p0, %p248_p2 }
   0x6   : > { %p313_p4 = scmp.lt.s32.totalorder (!%p249_p3), %s735_s18, 1  ;;  %v745_v0 = vmov (!%p249_p3), 0   ;;  %v368_v1 = vld [vmem:[%s823_s2] sm:$0xff] (!%p249_p3)  ;;  %vm378_vm0 = vcmask (!%p249_p3), 1043456   ;;  %vm374_vm1 = vcmask (!%p249_p3), 64512   ;;  %vm442_vm2 = vcmask (!%p249_p3), 7168  }
   0x7   : > { %252 = sbr.rel (%p249_p3) target bundleno = 392 (0x188), region = 32  ;;  %417 = vmatprep.mubr.bf16.mxu0 (!%p249_p3), %v745_v0  ;;  %720 = vset.pattern.permute.xlu0 (!%p249_p3), %v745_v0  ;;  %v367_v7 = vld [vmem:[%s822_s1] sm:$0xf] (!%p249_p3) }
   0x8   : > { %371 = vperm.xlu0 (!%p249_p3), %720, %v368_v1  }
   0xe   : > { %s832_s18 = smov (!%p313_p4, %s735_s18), 1 }
   0xf   : > { %s692_s24 = sshll.u32 %s832_s18, 4  ;;  %s693_s30 = sshll.u32 %s832_s18, 3 }
  0x10   : > { %s320_s27 = scalar_lea.vmem %s821_s0, %s692_s24  ;;  %s342_s8 = scalar_lea.vmem %s824_s3, %s693_s30 }
  0x11   : > { %v364_v2 = vld [vmem:[%s320_s27 + $0x8] sm:$0xff]  ;;  %v363_v3 = vld [vmem:[%s320_s27] sm:$0xff]  ;;  %s351_s11 = scalar_lea.vmem %s825_s4, %s693_s30  ;;  %s360_s14 = scalar_lea.vmem %s826_s5, %s693_s30 }
  0x12   : > { %v366_v4 = vpack.c.bf16 %v364_v2, %v364_v2  ;;  %v365_v5 = vpack.c.bf16 %v363_v3, %v363_v3 }
  0x14   : > { %687 = vmatprep.subr.msk.bf16.mxu0 %vm378_vm0, %v366_v4  ;;  %v380_v6 = vsel %vm378_vm0, %v365_v5, 0 }
  0x15   : > { %386 = vmatpush1.bf16.msra.mxu0 %v380_v6 }
  0x18   : > { %688 = vmatmul.mubr.msk.bf16.vlgmr.msra.gmra.mrb[0].mxu0 %vm374_vm1, %v367_v7 }
  0x87   : > { %v372_v8 = vpop.permute.xlu0 %371 }
  0xeb   : > { %v419_v9 = vpop.f32.mrb[0].mxu0 }
  0xec   : > { %v420_v10 = vadd.f32 %v419_v9, %v372_v8  ;;  %v421_v11 = vpop.f32.mrb[1].mxu0 }
  0xed   : > { %v422_v12 = vadd.f32 %v421_v11, %v372_v8  ;;  %v423_v13 = vpop.f32.mrb[2].mxu0 }
  0xee   : > { %v426_v14 = vmax.f32 %v420_v10, 0.0  ;;  %v424_v15 = vpop.f32.mrb[3].mxu0 }
  0xef   : > { %v427_v16 = vmax.f32 %v422_v12, 0.0 }
  0xf0   : > { %v428_v17 = vpack.c.bf16 %v426_v14, %v426_v14 }
  0xf1   : > { %v429_v18 = vpack.c.bf16 %v427_v16, %v427_v16  ;;  %v694_v19 = vpack.c.bf16 %v427_v16, %v426_v14 }
  0xf2   : > { %v437_v20 = vunpack.c.l.bf16 %v428_v17 }
  0xf3   : > { %436 = vst [vmem:[%s342_s8] sm:$0xff] %v694_v19  ;;  %v438_v21 = vunpack.c.l.bf16 %v429_v18 }
  0xf4   : > { %v444_v22 = vmul.f32 %v437_v20, %v437_v20 }
  0xf5   : > { %v439_v23 = vadd.f32 %v438_v21, %v437_v20  ;;  %v445_v24 = vmul.f32 %v438_v21, %v438_v21 }
  0xf7   : > { %440 = vadd.xlane.f32.xlu0 %v439_v23  ;;  %v446_v25 = vadd.f32 %v445_v24, %v444_v22 }
  0xf9   : > { %447 = vadd.xlane.f32.xlu1 %v446_v25 }
 0x184   : > { %v441_v26 = vpop.xlane.xlu0 %440 }
 0x185   : > { %443 = vst.msk [vmem:[%s351_s11] sm:$0xff] %vm442_vm2, %v441_v26 }
 0x186   : > { %v448_v27 = vpop.xlane.xlu1 %447 }
 0x187   : > { %449 = vst.msk [vmem:[%s360_s14] sm:$0xff] %vm442_vm2, %v448_v27 }
 0x188 PF: > { %s16_s20 = sadd.s32 1, %s743_s20   ;;  %s827_s18 = smov %s739_s19 }
 0x189   : > { %p13_p5 = scmp.ge.s32.totalorder %s16_s20, 4   ;;  %s828_s19 = smov %s830_s21 }
 0x18b   :  { %15 = sbr.rel (!%p13_p5) target bundleno = 2 (0x2), region = 92 }

// kernel: unet_block_forward.3
= control target key start
LH: loop header
LB: loop body
LE: loop exit
PB: predicated region body
PF: predicated region fallthrough
CT: control target
= control target key end

     0   :  { %s898_s18 = smov 0   ;;  %s900_s19 = smov 0   ;;  %s982_s0 = inlined_call_operand.vmem [shape: f32[2,8,64], index: 0, kind: input, shape index: {}]   ;;  %s983_s1 = inlined_call_operand.vmem [shape: bf16[32,8], index: 1, kind: input, shape index: {}]   ;;  %s984_s2 = inlined_call_operand.vmem [shape: f32[32,1], index: 2, kind: input, shape index: {}]   ;;  %s985_s3 = inlined_call_operand.vmem [shape: bf16[2,32,64], index: 3, kind: output, shape index: {0}]   ;;  %s986_s4 = inlined_call_operand.vmem [shape: f32[2,32,1], index: 4, kind: output, shape index: {1}]   ;;  %s987_s5 = inlined_call_operand.vmem [shape: f32[2,32,1], index: 5, kind: output, shape index: {2}]  }
   0x1   :  { %s902_s20 = smov 0  }
   0x2 LB: > { %s35_s21 = sadd.s32 1, %s861_s19  ;;  %p779_p0 = scmp.ge.s32.totalorder %s865_s20, 1  ;;  %s865_s20 = sphi %s902_s20, %s16_s20   ;;  %s861_s19 = sphi %s900_s19, %s989_s19   ;;  %s857_s18 = sphi %s898_s18, %s988_s18  }
   0x3   : > { %p37_p1 = scmp.ge.s32.totalorder %s35_s21, 2  ;;  %p249_p2 = scmp.lt.s32.totalorder %s865_s20, 3 }
   0x5   : > { %s991_s21 = smov (%p37_p1, %s35_s21), 0  ;;  %p250_p3 = pnand %p779_p0, %p249_p2 }
   0x6   : > { %p316_p4 = scmp.lt.s32.totalorder (!%p250_p3), %s857_s18, 1  ;;  %v841_v0 = vld [vmem:[%s983_s1] sm:$0xff] (!%p250_p3)   ;;  %vm413_vm0 = vcmask (!%p250_p3), 64512   ;;  %v381_v1 = vld [vmem:[%s984_s2 + $0x10] sm:$0xff] (!%p250_p3)  ;;  %v867_v2 = vmov (!%p250_p3), 0   ;;  %v382_v4 = vld [vmem:[%s984_s2 + $0x18] sm:$0xff] (!%p250_p3) }
   0x7   : > { %253 = sbr.rel (%p250_p3) target bundleno = 406 (0x196), region = 32  ;;  %809 = vmatprep.mubr.msk.bf16.mxu0 (!%p250_p3), %vm413_vm0, %v841_v0  ;;  %840 = vset.pattern.permute.xlu1 (!%p250_p3), %v867_v2  ;;  %v379_v3 = vld [vmem:[%s984_s2] sm:$0xff] (!%p250_p3)  ;;  %vm420_vm1 = vcmask (!%p250_p3), 1043456   ;;  %v380_v6 = vld [vmem:[%s984_s2 + $0x8] sm:$0xff] (!%p250_p3)  ;;  %vm493_vm2 = vcmask (!%p250_p3), 519168   ;;  %vm502_vm3 = vcmask (!%p250_p3), 523264  }
   0x8   : > { %395 = vperm.xlu1 (!%p250_p3), %840, %v381_v1   ;;  %839 = vset.pattern.permute.xlu0 (!%p250_p3), %v867_v2  ;;  %v842_v9 = vld [vmem:[%s983_s1 + $0x8] sm:$0xff] (!%p250_p3)   ;;  %vm515_vm4 = vcmask (!%p250_p3), 7168  }
   0x9   : > { %385 = vperm.xlu0 (!%p250_p3), %839, %v379_v3  }
   0xc   : > { %400 = vperm.xlu1 (!%p250_p3), %840, %v382_v4  }
   0xd   : > { %390 = vperm.xlu0 (!%p250_p3), %839, %v380_v6  }
   0xe   : > { %s993_s18 = smov (!%p316_p4, %s857_s18), 1 }
   0xf   : > { %s780_s28 = sshll.u32 %s993_s18, 3  ;;  %s797_s13 = sshll.u32 %s993_s18, 4 }
  0x10   : > { %s322_s6 = scalar_lea.vmem %s982_s0, %s780_s28  ;;  %s346_s16 = scalar_lea.vmem %s985_s3, %s797_s13 }
  0x11   : > { %v373_v5 = vld [vmem:[%s322_s6] sm:$0xff]  ;;  %s798_s17 = sshll.u32 %s993_s18, 5 }
  0x12   : > { %v374_v7 = vpack.c.bf16 %v373_v5, %v373_v5  ;;  %s357_s24 = scalar_lea.vmem %s986_s4, %s798_s17  ;;  %s369_s27 = scalar_lea.vmem %s987_s5, %s798_s17 }
  0x14   : > { %813 = vmatprep.subr.msk.bf16.mxu0 %vm420_vm1, %v374_v7  ;;  %v422_v8 = vsel %vm420_vm1, %v374_v7, 0 }
  0x15   : > { %808 = vmatpush3.bf16.msra.mxu0 %v422_v8 }
  0x18   : > { %810 = vmatmul.mubr.msk.bf16.vlgmr.msra.gmra.mrb[0].mxu0 %vm413_vm0, %v842_v9 }
  0x87   : > { %v396_v11 = vpop.permute.xlu1 %395 }
  0x88   : > { %v386_v10 = vpop.permute.xlu0 %385 }
  0x8b   : > { %v401_v16 = vpop.permute.xlu1 %400 }
  0x8c   : > { %v391_v15 = vpop.permute.xlu0 %390 }
  0xeb   : > { %v811_v12 = vpop.f32.mrb[0].mxu0 }
  0xec   : > { %v467_v13 = vadd.f32 %v811_v12, %v396_v11  ;;  %v458_v14 = vpop.f32.mrb[1].mxu0 }
  0xed   : > { %v459_v17 = vadd.f32 %v458_v14, %v386_v10  ;;  %v812_v18 = vpop.f32.mrb[2].mxu0 }
  0xee   : > { %v475_v19 = vmax.f32 %v467_v13, 0.0  ;;  %v470_v20 = vadd.f32 %v812_v18, %v401_v16  ;;  %v461_v21 = vpop.f32.mrb[3].mxu0 }
  0xef   : > { %v473_v22 = vmax.f32 %v459_v17, 0.0  ;;  %v462_v23 = vadd.f32 %v461_v21, %v391_v15 }
  0xf0   : > { %v802_v24 = vpack.c.bf16 %v475_v19, %v475_v19  ;;  %v476_v25 = vmax.f32 %v470_v20, 0.0 }
  0xf1   : > { %v800_v26 = vpack.c.bf16 %v473_v22, %v473_v22  ;;  %v474_v27 = vmax.f32 %v462_v23, 0.0 }
  0xf2   : > { %496 = vst.msk [vmem:[%s346_s16 + $0x8] sm:$0xf] %vm493_vm2, %v802_v24  ;;  %v478_v28 = vpack.c.bf16 %v476_v25, %v475_v19  ;;  %v803_v29 = vpack.c.bf16 %v476_v25, %v476_v25 }
  0xf3   : > { %494 = vst.msk [vmem:[%s346_s16] sm:$0xf] %vm493_vm2, %v800_v26  ;;  %v477_v30 = vpack.c.bf16 %v474_v27, %v473_v22  ;;  %v801_v31 = vpack.c.bf16 %v474_v27, %v474_v27 }
  0xf4   : > { %497 = vst.msk [vmem:[%s346_s16 + $0xc] sm:$0xf] %vm493_vm2, %v803_v29  ;;  %v500_v32 = vunpack.c.l.bf16 %v478_v28  ;;  %v501_v36 = vunpack.c.h.bf16 %v478_v28 }
  0xf5   : > { %495 = vst.msk [vmem:[%s346_s16 + $0x4] sm:$0xf] %vm493_vm2, %v801_v31  ;;  %v499_v33 = vunpack.c.h.bf16 %v477_v30  ;;  %v498_v34 = vunpack.c.l.bf16 %v477_v30 }
  0xf6   : > { %v509_v35 = vsel %vm502_vm3, %v500_v32, 0.0  ;;  %v512_v39 = vsel %vm502_vm3, %v501_v36, 0.0  ;;  %v522_v41 = vmul.f32 %v500_v32, %v500_v32  ;;  %v523_v46 = vmul.f32 %v501_v36, %v501_v36 }
  0xf7   : > { %510 = vadd.xlane.f32.xlu0 %v509_v35  ;;  %v506_v37 = vsel %vm502_vm3, %v499_v33, 0.0  ;;  %v520_v38 = vmul.f32 %v498_v34, %v498_v34  ;;  %v503_v42 = vsel %vm502_vm3, %v498_v34, 0.0  ;;  %v521_v43 = vmul.f32 %v499_v33, %v499_v33 }
  0xf8   : > { %507 = vadd.xlane.f32.xlu1 %v506_v37  ;;  %v530_v44 = vsel %vm502_vm3, %v522_v41, 0.0  ;;  %v533_v47 = vsel %vm502_vm3, %v523_v46, 0.0 }
  0xf9   : > { %v524_v40 = vsel %vm502_vm3, %v520_v38, 0.0  ;;  %v527_v45 = vsel %vm502_vm3, %v521_v43, 0.0 }
  0xfb   : > { %513 = vadd.xlane.f32.xlu0 %v512_v39 }
  0xfc   : > { %525 = vadd.xlane.f32.xlu1 %v524_v40 }
  0xff   : > { %504 = vadd.xlane.f32.xlu0 %v503_v42 }
 0x100   : > { %531 = vadd.xlane.f32.xlu1 %v530_v44 }
 0x103   : > { %528 = vadd.xlane.f32.xlu0 %v527_v45 }
 0x107   : > { %534 = vadd.xlane.f32.xlu0 %v533_v47 }
 0x184   : > { %v511_v48 = vpop.xlane.xlu0 %510 }
 0x185   : > { %518 = vst.msk [vmem:[%s357_s24 + $0x10] sm:$0xff] %vm515_vm4, %v511_v48  ;;  %v508_v49 = vpop.xlane.xlu1 %507 }
 0x186   : > { %517 = vst.msk [vmem:[%s357_s24 + $0x8] sm:$0xff] %vm515_vm4, %v508_v49 }
 0x188   : > { %v514_v50 = vpop.xlane.xlu0 %513 }
 0x189   : > { %519 = vst.msk [vmem:[%s357_s24 + $0x18] sm:$0xff] %vm515_vm4, %v514_v50  ;;  %v526_v51 = vpop.xlane.xlu1 %525 }
 0x18a   : > { %536 = vst.msk [vmem:[%s369_s27] sm:$0xff] %vm515_vm4, %v526_v51 }
 0x18c   : > { %v505_v52 = vpop.xlane.xlu0 %504 }
 0x18d   : > { %516 = vst.msk [vmem:[%s357_s24] sm:$0xff] %vm515_vm4, %v505_v52  ;;  %v532_v53 = vpop.xlane.xlu1 %531 }
 0x18e   : > { %538 = vst.msk [vmem:[%s369_s27 + $0x10] sm:$0xff] %vm515_vm4, %v532_v53 }
 0x190   : > { %v529_v54 = vpop.xlane.xlu0 %528 }
 0x191   : > { %537 = vst.msk [vmem:[%s369_s27 + $0x8] sm:$0xff] %vm515_vm4, %v529_v54 }
 0x194   : > { %v535_v55 = vpop.xlane.xlu0 %534 }
 0x195   : > { %539 = vst.msk [vmem:[%s369_s27 + $0x18] sm:$0xff] %vm515_vm4, %v535_v55 }
 0x196 PF: > { %s16_s20 = sadd.s32 1, %s865_s20   ;;  %s988_s18 = smov %s861_s19 }
 0x197   : > { %p13_p5 = scmp.ge.s32.totalorder %s16_s20, 4   ;;  %s989_s19 = smov %s991_s21 }
 0x199   :  { %15 = sbr.rel (!%p13_p5) target bundleno = 2 (0x2), region = 92 }

// kernel: unet_block_forward.5
= control target key start
LH: loop header
LB: loop body
LE: loop exit
PB: predicated region body
PF: predicated region fallthrough
CT: control target
= control target key end

     0   :  { %s577_s21 = smov 0   ;;  %s579_s22 = smov 0   ;;  %s625_s0 = inlined_call_operand.vmem [shape: bf16[2,8,256], index: 0, kind: input, shape index: {}]   ;;  %s626_s1 = inlined_call_operand.vmem [shape: bf16[2,8,256], index: 1, kind: input, shape index: {}]   ;;  %s627_s2 = inlined_call_operand.vmem [shape: f32[8,1], index: 2, kind: input, shape index: {}]   ;;  %s628_s3 = inlined_call_operand.vmem [shape: f32[8,1], index: 3, kind: input, shape index: {}]   ;;  %s629_s4 = inlined_call_operand.vmem [shape: f32[8,1], index: 4, kind: input, shape index: {}]   ;;  %s630_s5 = inlined_call_operand.vmem [shape: f32[8,1], index: 5, kind: input, shape index: {}]   ;;  %s631_s6 = inlined_call_operand.vmem [shape: f32[2,16,256], index: 6, kind: output, shape index: {}]  }
   0x1   :  { %s581_s23 = smov 0  }
   0x2 LB: > { %s28_s24 = sadd.s32 1, %s535_s22  ;;  %p478_p0 = scmp.ge.s32.totalorder %s539_s23, 1  ;;  %s539_s23 = sphi %s581_s23, %s16_s23   ;;  %s535_s22 = sphi %s579_s22, %s633_s22   ;;  %s531_s21 = sphi %s577_s21, %s632_s21  }
   0x3   : > { %p30_p1 = scmp.ge.s32.totalorder %s28_s24, 2  ;;  %p250_p2 = scmp.lt.s32.totalorder %s539_s23, 3 }
   0x5   : > { %s635_s24 = smov (%p30_p1, %s28_s24), 0  ;;  %p251_p3 = pnand %p478_p0, %p250_p2 }
   0x6   : > { %v338_v0 = vld [vmem:[%s628_s3] sm:$0xff] (!%p251_p3)  ;;  %v541_v2 = vmov (!%p251_p3), 0   ;;  %p298_p4 = scmp.lt.s32.totalorder (!%p251_p3), %s531_s21, 1 }
   0x7   : > { %254 = sbr.rel (%p251_p3) target bundleno = 145 (0x91), region = 44  ;;  %v330_v1 = vld [vmem:[%s627_s2] sm:$0xff] (!%p251_p3)  ;;  %516 = vset.pattern.permute.xlu1 (!%p251_p3), %v541_v2  ;;  %515 = vset.pattern.permute.xlu0 (!%p251_p3), %v541_v2 }
   0x8   : > { %341 = vperm.xlu1 (!%p251_p3), %516, %v338_v0   ;;  %333 = vperm.xlu0 (!%p251_p3), %515, %v330_v1   ;;  %v359_v3 = vld [vmem:[%s630_s5] sm:$0xff] (!%p251_p3) }
   0x9   : > { %v351_v4 = vld [vmem:[%s629_s4] sm:$0xff] (!%p251_p3) }
   0xc   : > { %362 = vperm.xlu1 (!%p251_p3), %516, %v359_v3   ;;  %354 = vperm.xlu0 (!%p251_p3), %515, %v351_v4  }
   0xe   : > { %s637_s21 = smov (!%p298_p4, %s531_s21), 1 }
   0xf   : > { %s487_s9 = sshll.u32 %s637_s21, 3  ;;  %s489_s16 = sshll.u32 %s637_s21, 5 }
  0x10   : > { %s305_s12 = scalar_lea.vmem %s625_s0, %s487_s9  ;;  %s315_s15 = scalar_lea.vmem %s626_s1, %s487_s9 }
  0x11   : > { %v327_v5 = vld [vmem:[%s305_s12] sm:$0xff]  ;;  %s325_s19 = scalar_lea.vmem %s631_s6, %s489_s16 }
  0x12   : > { %v328_v6 = vunpack.c.l.bf16 %v327_v5  ;;  %v329_v7 = vunpack.c.h.bf16 %v327_v5  ;;  %v348_v8 = vld [vmem:[%s315_s15] sm:$0xff] }
  0x13   : > { %v349_v13 = vunpack.c.l.bf16 %v348_v8  ;;  %v350_v14 = vunpack.c.h.bf16 %v348_v8 }
  0x87   : > { %v342_v9 = vpop.permute.xlu1 %341  ;;  %v334_v10 = vpop.permute.xlu0 %333 }
  0x88   : > { %v336_v11 = vmul.f32 %v334_v10, %v328_v6  ;;  %v337_v12 = vmul.f32 %v334_v10, %v329_v7 }
  0x8a   : > { %v344_v15 = vadd.f32 %v342_v9, %v336_v11  ;;  %v345_v16 = vadd.f32 %v342_v9, %v337_v12 }
  0x8b   : > { %v355_v17 = vpop.permute.xlu0 %354  ;;  %v363_v20 = vpop.permute.xlu1 %362 }
  0x8c   : > { %346 = vst [vmem:[%s325_s19] sm:$0xff] %v344_v15  ;;  %347 = vst [vmem:[%s325_s19 + $0x8] sm:$0xff] %v345_v16  ;;  %v357_v18 = vmul.f32 %v355_v17, %v349_v13  ;;  %v358_v19 = vmul.f32 %v355_v17, %v350_v14 }
  0x8e   : > { %v365_v21 = vadd.f32 %v363_v20, %v357_v18  ;;  %v366_v22 = vadd.f32 %v363_v20, %v358_v19 }
  0x90   : > { %367 = vst [vmem:[%s325_s19 + $0x10] sm:$0xff] %v365_v21  ;;  %368 = vst [vmem:[%s325_s19 + $0x18] sm:$0xff] %v366_v22 }
  0x91 PF: > { %s16_s23 = sadd.s32 1, %s539_s23   ;;  %s632_s21 = smov %s535_s22 }
  0x92   : > { %p13_p5 = scmp.ge.s32.totalorder %s16_s23, 4   ;;  %s633_s22 = smov %s635_s24 }
  0x94   :  { %15 = sbr.rel (!%p13_p5) target bundleno = 2 (0x2), region = 77 }

</bundles_post_ra>
